<compile_context>
chip_gen: v7x
topology: tpu7x:2x2x1
jax: 0.10.0
libtpu: 0.0.40
codegen_flags: <defaults>
</compile_context>

<pallas_src>
import functools

import jax
import jax.numpy as jnp
from jax.experimental import pallas as pl
from jax.experimental.pallas import tpu as pltpu


def _acktr_mlp_kernel(x_ref, w1_ref, b1_ref, w2_ref, b2_ref, w3_ref, b3_ref,
                      means_ref):
    # Hot path: three MXU matmuls with f32 accumulation, tanh on EUP, bias adds on VPU
    # (biases stay in-kernel: the add co-issues with MXU work — slack-slot filler).
    # Activations are cast to the weight dtype before each dot so the bf16-input path
    # keeps all three matmuls in bf16 on the MXU while tanh/bias math stays f32.
    x = x_ref[...]

    h1 = jnp.tanh(
        jnp.dot(x, w1_ref[...], preferred_element_type=jnp.float32) + b1_ref[...]
    )
    h2 = jnp.tanh(
        jnp.dot(h1.astype(w2_ref.dtype), w2_ref[...],
                preferred_element_type=jnp.float32) + b2_ref[...]
    )
    means = (
        jnp.dot(h2.astype(w3_ref.dtype), w3_ref[...],
                preferred_element_type=jnp.float32) + b3_ref[...]
    )
    means_ref[...] = means.astype(means_ref.dtype)


def _round_up(x, m):
    return (x + m - 1) // m * m


def _padded_tile_bytes(rows, cols, itemsize):
    # VMEM buffers are laid out on (8, 128) tiles — account for lane/sublane padding.
    return _round_up(max(rows, 1), 8) * _round_up(max(cols, 1), 128) * itemsize


@functools.partial(jax.jit, static_argnames=("tile_b", "use_bf16_inputs"))
def acktr_forward(x, params, tile_b=1024, use_bf16_inputs=False):
    """Full ACKTR forward.

    Returns (means, stds):
      means: (B, A) f32
      stds:  (1, A) f32 — batch-independent; broadcast at the consumer.
    """
    w1, b1, w2, b2, w3, b3, logstd = params
    B, obs = x.shape
    H = w1.shape[1]
    A = w3.shape[1]

    if use_bf16_inputs:
        # Halves the dominant HBM stream (x) and uses the bf16 MXU path.
        # Accumulation, biases and tanh stay f32 (safe on v5e).
        x = x.astype(jnp.bfloat16)
        w1 = w1.astype(jnp.bfloat16)
        w2 = w2.astype(jnp.bfloat16)
        w3 = w3.astype(jnp.bfloat16)

    # Balanced batch tiling: tiles are a multiple of 8 (f32 sublane) and near-equal
    # in size so the ragged last block is never mostly padding. Force >= 2 grid steps
    # whenever the batch allows it so the "parallel" axis can megacore-shard on v7x.
    num_tiles = pl.cdiv(B, tile_b)
    if num_tiles < 2 and B > 8:
        num_tiles = 2
    TILE_B = _round_up(pl.cdiv(B, num_tiles), 8)
    grid = (pl.cdiv(B, TILE_B),)

    # Weights/biases: full-array blocks with a constant index_map -> VMEM-resident,
    # not re-fetched per grid step.
    def const_spec(shape):
        return pl.BlockSpec(shape, lambda i: (0, 0))

    in_itemsize = 2 if use_bf16_inputs else 4

    # Lane-padding-aware VMEM estimate: double-buffered x/means tiles, resident
    # weights/biases (x2 for default double-buffering), per-tile f32 activations.
    vmem_est = (
        2 * _padded_tile_bytes(TILE_B, obs, in_itemsize)        # x tiles
        + 2 * _padded_tile_bytes(TILE_B, A, 4)                  # means tiles
        + 2 * _padded_tile_bytes(TILE_B, H, 4)                  # h1/h2 temporaries
        + 2 * (_padded_tile_bytes(obs, H, in_itemsize)
               + _padded_tile_bytes(H, H, in_itemsize)
               + _padded_tile_bytes(H, A, in_itemsize)
               + 2 * _padded_tile_bytes(1, H, 4)
               + _padded_tile_bytes(1, A, 4))
    )
    # Headroom for spills; floor at 32 MiB (raises v5e's 16 MiB scoped default),
    # cap at 48 MiB (under v7x's 64 MiB physical VMEM).
    vmem_limit = int(min(max(4 * vmem_est, 32 << 20), 48 << 20))

    flops = 2 * B * (obs * H + H * H + H * A)
    transcendentals = 2 * B * H  # two tanh layers
    bytes_accessed = (
        in_itemsize * (B * obs + obs * H + H * H + H * A)   # x + weights in
        + 4 * (2 * H + A)                                     # biases in
        + 4 * B * A                                           # means out
    )

    means = pl.pallas_call(
        _acktr_mlp_kernel,
        out_shape=jax.ShapeDtypeStruct((B, A), jnp.float32),
        grid_spec=pltpu.PrefetchScalarGridSpec(
            num_scalar_prefetch=0,
            grid=grid,
            in_specs=[
                pl.BlockSpec((TILE_B, obs), lambda i: (i, 0)),  # x tile
                const_spec((obs, H)), const_spec((1, H)),       # layer 1
                const_spec((H, H)), const_spec((1, H)),         # layer 2
                const_spec((H, A)), const_spec((1, A)),         # layer 3
            ],
            out_specs=pl.BlockSpec((TILE_B, A), lambda i: (i, 0)),
        ),
        compiler_params=pltpu.CompilerParams(
            dimension_semantics=("parallel",),  # megacore-shard batch on v7x
            vmem_limit_bytes=vmem_limit,
        ),
        cost_estimate=pl.CostEstimate(
            flops=flops,
            transcendentals=transcendentals,
            bytes_accessed=bytes_accessed,
        ),
    )(x, w1, b1, w2, b2, w3, b3)

    # stds is independent of x: a (1, A) vector; broadcast at the consumer.
    stds = jnp.clip(jnp.exp(logstd), 0.0007, 50.0)
    return means, stds


def init_params(key, observation_dim, hidden_size, num_actions):
    """Deterministic synthetic init (Kaiming-uniform-ish like torch Linear default)."""
    ks = jax.random.split(key, 6)

    def linear_init(kw, kb, fan_in, fan_out):
        bound = 1.0 / jnp.sqrt(fan_in)
        w = jax.random.uniform(kw, (fan_in, fan_out), jnp.float32, -bound, bound)
        b = jax.random.uniform(kb, (1, fan_out), jnp.float32, -bound, bound)
        return w, b

    w1, b1 = linear_init(ks[0], ks[1], observation_dim, hidden_size)
    w2, b2 = linear_init(ks[2], ks[3], hidden_size, hidden_size)
    w3, b3 = linear_init(ks[4], ks[5], hidden_size, num_actions)
    # AddBias initialized from torch.zeros(num_actions)
    logstd = jnp.zeros((1, num_actions), jnp.float32)
    return (w1, b1, w2, b2, w3, b3, logstd)


def reference_forward(x, params):
    w1, b1, w2, b2, w3, b3, logstd = params
    h1 = jnp.tanh(x @ w1 + b1)
    h2 = jnp.tanh(h1 @ w2 + b2)
    means = h2 @ w3 + b3
    stds = jnp.clip(jnp.exp(logstd), 0.0007, 50.0)
    return means, stds


if __name__ == "__main__":
    observation_dim = 16
    hidden_size = 64
    num_actions = 8

    key = jax.random.PRNGKey(0)
    k_params, k_x1, k_x2 = jax.random.split(key, 3)
    params = init_params(k_params, observation_dim, hidden_size, num_actions)

    # Test 1: small batch, single tile, f32.
    batch = 8
    x = jax.random.normal(k_x1, (batch, observation_dim), jnp.float32)
    means, stds = acktr_forward(x, params)
    jax.block_until_ready((means, stds))

    ref_means, ref_stds = reference_forward(x, params)
    assert means.shape == (batch, num_actions)
    assert stds.shape == (1, num_actions)
    assert jnp.allclose(means, ref_means, atol=1e-5, rtol=1e-5)
    assert jnp.allclose(stds, ref_stds, atol=1e-6, rtol=1e-6)

    # Test 2: multi-tile grid with a ragged last block (no wrapper padding):
    # B=200, tile_b=64 -> balanced TILE_B=56, grid=(4,), last tile 32 valid rows.
    batch2 = 200
    x2 = jax.random.normal(k_x2, (batch2, observation_dim), jnp.float32)
    means2, stds2 = acktr_forward(x2, params, tile_b=64)
    jax.block_until_ready((means2, stds2))
    ref_means2, ref_stds2 = reference_forward(x2, params)
    assert means2.shape == (batch2, num_actions)
    assert jnp.allclose(means2, ref_means2, atol=1e-5, rtol=1e-5)
    assert jnp.allclose(stds2, ref_stds2, atol=1e-6, rtol=1e-6)

    # Test 3: bf16-input fast path (optional; looser tolerance vs f32 reference).
    means3, stds3 = acktr_forward(x2, params, tile_b=64, use_bf16_inputs=True)
    jax.block_until_ready((means3, stds3))
    assert means3.shape == (batch2, num_actions)
    assert jnp.allclose(means3, ref_means2, atol=5e-2, rtol=5e-2)
    assert jnp.allclose(stds3, ref_stds2, atol=1e-6, rtol=1e-6)

    print("KERNEL_OK")
</pallas_src>

<mosaic_0001>
module attributes {stable_mosaic.version = 11 : i64} {
  func.func @_acktr_mlp_kernel(%arg0: i32, %arg1: memref<8x16xf32, #tpu.memory_space<vmem>>, %arg2: memref<16x64xf32, #tpu.memory_space<vmem>>, %arg3: memref<1x64xf32, #tpu.memory_space<vmem>>, %arg4: memref<64x64xf32, #tpu.memory_space<vmem>>, %arg5: memref<1x64xf32, #tpu.memory_space<vmem>>, %arg6: memref<64x8xf32, #tpu.memory_space<vmem>>, %arg7: memref<1x8xf32, #tpu.memory_space<vmem>>, %arg8: memref<8x8xf32, #tpu.memory_space<vmem>>) attributes {dimension_semantics = [#tpu.dimension_semantics<parallel>], iteration_bounds = array<i64: 1>, scalar_prefetch = 0 : i64, scratch_operands = 0 : i64, tpu.core_type = #tpu.core_type<tc>, window_params = [{transform_indices = @transform_0, window_bounds = array<i64: 8, 16>}, {pipeline_mode = #tpu.pipeline_mode<synchronous>, transform_indices = @transform_1, window_bounds = array<i64: 16, 64>}, {pipeline_mode = #tpu.pipeline_mode<synchronous>, transform_indices = @transform_2, window_bounds = array<i64: 1, 64>}, {pipeline_mode = #tpu.pipeline_mode<synchronous>, transform_indices = @transform_3, window_bounds = array<i64: 64, 64>}, {pipeline_mode = #tpu.pipeline_mode<synchronous>, transform_indices = @transform_4, window_bounds = array<i64: 1, 64>}, {pipeline_mode = #tpu.pipeline_mode<synchronous>, transform_indices = @transform_5, window_bounds = array<i64: 64, 8>}, {pipeline_mode = #tpu.pipeline_mode<synchronous>, transform_indices = @transform_6, window_bounds = array<i64: 1, 8>}, {transform_indices = @transform_7, window_bounds = array<i64: 8, 8>}]} {
    %c0 = arith.constant 0 : index
    %c0_0 = arith.constant 0 : index
    %0 = vector.load %arg1[%c0, %c0_0] : memref<8x16xf32, #tpu.memory_space<vmem>>, vector<8x16xf32>
    %c0_1 = arith.constant 0 : index
    %c0_2 = arith.constant 0 : index
    %1 = vector.load %arg2[%c0_1, %c0_2] : memref<16x64xf32, #tpu.memory_space<vmem>>, vector<16x64xf32>
    %cst = arith.constant dense<0.000000e+00> : vector<8x64xf32>
    %2 = tpu.matmul %0, %1, %cst {dimension_numbers = #tpu.dot_dimension_numbers<[1], [0], [0], [1], [0, 0, 1, 1], [], []>} : vector<8x16xf32>, vector<16x64xf32>, vector<8x64xf32> -> vector<8x64xf32>
    %c0_3 = arith.constant 0 : index
    %c0_4 = arith.constant 0 : index
    %3 = vector.load %arg3[%c0_3, %c0_4] : memref<1x64xf32, #tpu.memory_space<vmem>>, vector<1x64xf32>
    %4 = vector.broadcast %3 : vector<1x64xf32> to vector<8x64xf32>
    %5 = arith.addf %2, %4 : vector<8x64xf32>
    %6 = math.tanh %5 : vector<8x64xf32>
    %c0_5 = arith.constant 0 : index
    %c0_6 = arith.constant 0 : index
    %7 = vector.load %arg4[%c0_5, %c0_6] : memref<64x64xf32, #tpu.memory_space<vmem>>, vector<64x64xf32>
    %cst_7 = arith.constant dense<0.000000e+00> : vector<8x64xf32>
    %8 = tpu.matmul %6, %7, %cst_7 {dimension_numbers = #tpu.dot_dimension_numbers<[1], [0], [0], [1], [0, 0, 1, 1], [], []>} : vector<8x64xf32>, vector<64x64xf32>, vector<8x64xf32> -> vector<8x64xf32>
    %c0_8 = arith.constant 0 : index
    %c0_9 = arith.constant 0 : index
    %9 = vector.load %arg5[%c0_8, %c0_9] : memref<1x64xf32, #tpu.memory_space<vmem>>, vector<1x64xf32>
    %10 = vector.broadcast %9 : vector<1x64xf32> to vector<8x64xf32>
    %11 = arith.addf %8, %10 : vector<8x64xf32>
    %12 = math.tanh %11 : vector<8x64xf32>
    %c0_10 = arith.constant 0 : index
    %c0_11 = arith.constant 0 : index
    %13 = vector.load %arg6[%c0_10, %c0_11] : memref<64x8xf32, #tpu.memory_space<vmem>>, vector<64x8xf32>
    %cst_12 = arith.constant dense<0.000000e+00> : vector<8x8xf32>
    %14 = tpu.matmul %12, %13, %cst_12 {dimension_numbers = #tpu.dot_dimension_numbers<[1], [0], [0], [1], [0, 0, 1, 1], [], []>} : vector<8x64xf32>, vector<64x8xf32>, vector<8x8xf32> -> vector<8x8xf32>
    %c0_13 = arith.constant 0 : index
    %c0_14 = arith.constant 0 : index
    %15 = vector.load %arg7[%c0_13, %c0_14] : memref<1x8xf32, #tpu.memory_space<vmem>>, vector<1x8xf32>
    %16 = vector.broadcast %15 : vector<1x8xf32> to vector<8x8xf32>
    %17 = arith.addf %14, %16 : vector<8x8xf32>
    %c0_15 = arith.constant 0 : index
    %c0_16 = arith.constant 0 : index
    %18 = vector.load %arg8[%c0_15, %c0_16] : memref<8x8xf32, #tpu.memory_space<vmem>>, vector<8x8xf32>
    tpu.vector_store %arg8[%c0_15, %c0_16], %17 {strides = array<i32>} : memref<8x8xf32, #tpu.memory_space<vmem>>, vector<8x8xf32>,
    return
  }
  func.func @transform_0(%arg0: i32) -> (i32, i32) {
    %c0_i32 = arith.constant 0 : i32
    %c0_i32_0 = arith.constant 0 : i32
    return %arg0, %c0_i32 : i32, i32
  }
  func.func @transform_1(%arg0: i32) -> (i32, i32) {
    %c0_i32 = arith.constant 0 : i32
    %c0_i32_0 = arith.constant 0 : i32
    %c0_i32_1 = arith.constant 0 : i32
    return %c0_i32, %c0_i32_0 : i32, i32
  }
  func.func @transform_2(%arg0: i32) -> (i32, i32) {
    %c0_i32 = arith.constant 0 : i32
    %c0_i32_0 = arith.constant 0 : i32
    %c0_i32_1 = arith.constant 0 : i32
    return %c0_i32, %c0_i32_0 : i32, i32
  }
  func.func @transform_3(%arg0: i32) -> (i32, i32) {
    %c0_i32 = arith.constant 0 : i32
    %c0_i32_0 = arith.constant 0 : i32
    %c0_i32_1 = arith.constant 0 : i32
    return %c0_i32, %c0_i32_0 : i32, i32
  }
  func.func @transform_4(%arg0: i32) -> (i32, i32) {
    %c0_i32 = arith.constant 0 : i32
    %c0_i32_0 = arith.constant 0 : i32
    %c0_i32_1 = arith.constant 0 : i32
    return %c0_i32, %c0_i32_0 : i32, i32
  }
  func.func @transform_5(%arg0: i32) -> (i32, i32) {
    %c0_i32 = arith.constant 0 : i32
    %c0_i32_0 = arith.constant 0 : i32
    %c0_i32_1 = arith.constant 0 : i32
    return %c0_i32, %c0_i32_0 : i32, i32
  }
  func.func @transform_6(%arg0: i32) -> (i32, i32) {
    %c0_i32 = arith.constant 0 : i32
    %c0_i32_0 = arith.constant 0 : i32
    %c0_i32_1 = arith.constant 0 : i32
    return %c0_i32, %c0_i32_0 : i32, i32
  }
  func.func @transform_7(%arg0: i32) -> (i32, i32) {
    %c0_i32 = arith.constant 0 : i32
    %c0_i32_0 = arith.constant 0 : i32
    return %arg0, %c0_i32 : i32, i32
  }
}

</mosaic_0001>

<bundles_post_ra>
// kernel: acktr_forward.1
= control target key start
LH: loop header
LB: loop body
LE: loop exit
PB: predicated region body
PF: predicated region fallthrough
CT: control target
= control target key end

     0   :  { %12 = vsyncpa [#allocation3], 0  ;;  %s660_s0 = inlined_call_operand.hbm [shape: f32[8,16], index: 0, kind: input, shape index: {}]   ;;  %s661_s1 = inlined_call_operand.vmem [shape: f32[16,64], index: 1, kind: input, shape index: {}]   ;;  %s662_s2 = inlined_call_operand.vmem [shape: f32[1,64], index: 2, kind: input, shape index: {}]   ;;  %s663_s3 = inlined_call_operand.vmem [shape: f32[64,64], index: 3, kind: input, shape index: {}]   ;;  %s664_s4 = inlined_call_operand.vmem [shape: f32[1,64], index: 4, kind: input, shape index: {}]   ;;  %s665_s5 = inlined_call_operand.vmem [shape: f32[64,8], index: 5, kind: input, shape index: {}]   ;;  %s666_s6 = inlined_call_operand.hbm [shape: f32[1,8], index: 6, kind: input, shape index: {}]   ;;  %s667_s7 = inlined_call_operand.hbm [shape: f32[8,8], index: 7, kind: output, shape index: {}]  }
   0x1   :  { %13 = vsyncpa [#allocation6], 0 }
   0x2   :  { %14 = vsyncpa [#allocation4], 0  ;;  %s513_s24 = smov [#allocation2]   ;;  %s514_s26 = smov [#allocation5]  }
   0x3   :  { %s21_s25 = sshll.u32 %s513_s24, 4  ;;  %s41_s27 = sshll.u32 %s514_s26, 4  ;;  %s22_s25 = int_to_ptr.vmem [resolvable:$true] %s21_s25  ;;  %s42_s27 = int_to_ptr.vmem [resolvable:$true] %s41_s27 }
   0x4   :  { %s441_s30 = scalar_lea.hbm %s660_s0, 128 }
   0x5   :  { %p442_p0 = scmp.ne.s32.totalorder %s660_s0, %s441_s30  ;;  %p445_p1 = scmp.lt.u32.totalorder %s441_s30, %s660_s0 }
   0x7   :  { %p447_p2 = pnand %p445_p1, %p442_p0 }
   0x9   :  { %450 = shalt.err (!%p447_p2)
}
   0xa   :  { %s451_s12 = scalar_lea.vmem %s22_s25, 128  ;;  %p456_p4 = scmp.lt.s32.totalorder %s22_s25, %s22_s25 }
   0xb   :  { %p452_p3 = scmp.ne.s32.totalorder %s22_s25, %s451_s12  ;;  %p457_p5 = scmp.lt.s32.totalorder %s451_s12, %s451_s12 }
   0xd   :  { %p458_p6 = por %p457_p5, %p456_p4 }
   0xf   :  { %p459_p7 = pnand %p458_p6, %p452_p3 }
  0x11   :  { %462 = shalt.err (!%p459_p7)
}
  0x12   :  { %24 = dma.hbm_to_vmem [thread:$0]  %s660_s0, 128, %s22_s25, [#allocation3]  }
  0x13   :  { %s463_s17 = scalar_lea.hbm %s666_s6, 16 }
  0x14   :  { %p464_p8 = scmp.ne.s32.totalorder %s666_s6, %s463_s17  ;;  %p467_p9 = scmp.lt.u32.totalorder %s463_s17, %s666_s6 }
  0x16   :  { %p469_p10 = pnand %p467_p9, %p464_p8 }
  0x18   :  { %472 = shalt.err (!%p469_p10)
}
  0x19   :  { %s473_s22 = scalar_lea.vmem %s42_s27, 16  ;;  %s477_s23 = scalar_lea.vmem %s42_s27, 32 }
  0x1a   :  { %p474_p11 = scmp.ne.s32.totalorder %s42_s27, %s473_s22  ;;  %p478_p12 = scmp.lt.s32.totalorder %s42_s27, %s42_s27 }
  0x1b   :  { %p479_p13 = scmp.lt.s32.totalorder %s477_s23, %s473_s22 }
  0x1d   :  { %p480_p0 = por %p479_p13, %p478_p12 }
  0x1f   :  { %p481_p1 = pnand %p480_p0, %p474_p11 }
  0x21   :  { %484 = shalt.err (!%p481_p1)
}
  0x22   :  { %44 = dma.hbm_to_vmem [thread:$0]  %s666_s6, 16, %s42_s27, [#allocation6]  }
  0x23   :  { %507 = dma.done.wait [#allocation3], 128  }
  0x24   :  { %508 = vsyncadd [#allocation3], 4294967168 }
  0x25   :  { %509 = dma.done.wait [#allocation6], 16  }
  0x26   :  { %510 = vsyncadd [#allocation6], 4294967280  ;;  %v515_v0 = vmov 0.0|0.0   ;;  %vm516_vm0 = vmmov 0   ;;  %v517_v1 = vmov 0.0   ;;  %v52_v2 = vld [vmem:[%s661_s1] sm:$0xff] }
  0x27   :  { %404 = vmatprep.subr.bf16.mxu0 %v515_v0  ;;  %363 = vmatprep.mubr.msk.f32.mxu0 %vm516_vm0, %v517_v1  ;;  %v53_v3 = vld [vmem:[%s661_s1 + $0x8] sm:$0xff]  ;;  %v136_v5 = vld [vmem:[%s663_s3] sm:$0xff]  ;;  %vm61_vm1 = vcmask 130048   ;;  %v138_v9 = vld [vmem:[%s663_s3 + $0x10] sm:$0xff]  ;;  %vm151_vm2 = vcmask 523264   ;;  %s518_s12 = smov [#allocation7]  }
  0x28   :  { %407 = vmatprep.subr.bf16.mxu1 %v515_v0  ;;  %382 = vmatprep.mubr.msk.f32.mxu1 %vm516_vm0, %v517_v1  ;;  %v405_v4 = vpack.c.bf16 %v53_v3, %v52_v2  ;;  %v137_v6 = vld [vmem:[%s663_s3 + $0x8] sm:$0xff]  ;;  %v51_v8 = vld [vmem:[#allocation2] sm:$0xff]  ;;  %v139_v10 = vld [vmem:[%s663_s3 + $0x18] sm:$0xff]  ;;  %s322_s13 = sshll.u32 %s518_s12, 4  ;;  %vm314_vm3 = vcmask 64512   ;;  %s323_s13 = int_to_ptr.vmem [resolvable:$true] %s322_s13 }
  0x29   :  { %v408_v7 = vpack.c.bf16 %v137_v6, %v136_v5  ;;  %v411_v11 = vpack.c.bf16 %v139_v10, %v138_v9  ;;  %v140_v12 = vld [vmem:[%s663_s3 + $0x20] sm:$0xff]  ;;  %v141_v13 = vld [vmem:[%s663_s3 + $0x28] sm:$0xff]  ;;  %v142_v15 = vld [vmem:[%s663_s3 + $0x30] sm:$0xff]  ;;  %p490_p3 = scmp.lt.s32.totalorder %s323_s13, %s323_s13 }
  0x2a   :  { %406 = vmatpush3.bf16.msra.mxu0 %v405_v4  ;;  %v414_v14 = vpack.c.bf16 %v141_v13, %v140_v12  ;;  %v143_v16 = vld [vmem:[%s663_s3 + $0x38] sm:$0xff]  ;;  %v226_v18 = vld [vmem:[%s665_s5] sm:$0xff]  ;;  %v227_v19 = vld [vmem:[%s665_s5 + $0x8] sm:$0xff] }
  0x2b   :  { %409 = vmatpush3.bf16.msra.mxu1 %v408_v7  ;;  %419 = vmatprep.subr.bf16.mxu0 %v515_v0  ;;  %v417_v17 = vpack.c.bf16 %v143_v16, %v142_v15  ;;  %v420_v20 = vpack.c.bf16 %v227_v19, %v226_v18  ;;  %v332_v21 = vld [vmem:[%s662_s2] ss:$0 sm:$0xff]  ;;  %v228_v26 = vld [vmem:[%s665_s5 + $0x10] sm:$0xff]  ;;  %v229_v27 = vld [vmem:[%s665_s5 + $0x18] sm:$0xff] }
  0x2c   :  { %410 = vmatprep.subr.bf16.mxu1 %v515_v0  ;;  %v423_v28 = vpack.c.bf16 %v229_v27, %v228_v26  ;;  %v230_v29 = vld [vmem:[%s665_s5 + $0x20] sm:$0xff]  ;;  %v231_v30 = vld [vmem:[%s665_s5 + $0x28] sm:$0xff]  ;;  %v232_v32 = vld [vmem:[%s665_s5 + $0x30] sm:$0xff] }
  0x2d   :  { %364 = vmatmul.mubr.msk.f32.vlgmr.msra.gmra.mrb[0].mxu0 %vm61_vm1, %v51_v8  ;;  %v426_v31 = vpack.c.bf16 %v231_v30, %v230_v29  ;;  %v233_v33 = vld [vmem:[%s665_s5 + $0x38] sm:$0xff]  ;;  %v334_v35 = vld [vmem:[%s664_s4] ss:$0 sm:$0xff]  ;;  %v336_v40 = vld [vmem:[#allocation5] ss:$0 sm:$0xff]  ;;  %s485_s5 = scalar_lea.vmem %s323_s13, 128 }
  0x2e   :  { %401 = vmatprep.mubr.msk.f32.mxu0 %vm516_vm0, %v517_v1  ;;  %421 = vmatpush3.bf16.msra.mxu0 %v420_v20  ;;  %v429_v34 = vpack.c.bf16 %v233_v33, %v232_v32  ;;  %p486_p2 = scmp.ne.s32.totalorder %s323_s13, %s485_s5  ;;  %p491_p4 = scmp.lt.s32.totalorder %s485_s5, %s485_s5 }
  0x2f   :  { %412 = vmatpush3.bf16.msra.mxu1 %v411_v11  ;;  %422 = vmatprep.subr.bf16.mxu0 %v515_v0 }
  0x30   :  { %413 = vmatprep.subr.bf16.mxu1 %v515_v0  ;;  %p492_p5 = por %p491_p4, %p490_p3 }
  0x32   :  { %424 = vmatpush3.bf16.msra.mxu0 %v423_v28  ;;  %p493_p6 = pnand %p492_p5, %p486_p2 }
  0x33   :  { %415 = vmatpush3.bf16.msra.mxu1 %v414_v14  ;;  %425 = vmatprep.subr.bf16.mxu0 %v515_v0 }
  0x34   :  { %416 = vmatprep.subr.bf16.mxu1 %v515_v0 }
  0x36   :  { %427 = vmatpush3.bf16.msra.mxu0 %v426_v31 }
  0x37   :  { %418 = vmatpush3.bf16.msra.mxu1 %v417_v17  ;;  %428 = vmatprep.subr.bf16.mxu0 %v515_v0 }
  0x3a   :  { %430 = vmatpush3.bf16.msra.mxu0 %v429_v34 }
 0x100   :  { %v131_v22 = vpop.f32.mrb[0].mxu0 }
 0x101   :  { %v132_v23 = vadd.f32 %v332_v21, %v131_v22  ;;  %v365_v24 = vpop.f32.mrb[1].mxu0 }
 0x103   :  { %437 = vtanh.f32 %v132_v23 }
 0x10d   :  { %v438_v25 = vpop.eup %437 }
 0x10e   :  { %383 = vmatmul.mubr.msk.f32.vlgmr.msra.gmra.mrb[0].mxu1 %vm151_vm2, %v438_v25 }
 0x1e1   :  { %v221_v36 = vpop.f32.mrb[0].mxu1 }
 0x1e2   :  { %v222_v37 = vadd.f32 %v334_v35, %v221_v36  ;;  %v384_v38 = vpop.f32.mrb[1].mxu1 }
 0x1e4   :  { %439 = vtanh.f32 %v222_v37 }
 0x1ee   :  { %v440_v39 = vpop.eup %439 }
 0x1ef   :  { %402 = vmatmul.mubr.msk.f32.vlgmr.msra.gmra.mrb[2].mxu0 %vm151_vm2, %v440_v39 }
 0x2c2   :  { %v310_v41 = vpop.f32.mrb[2].mxu0 }
 0x2c3   :  { %v311_v42 = vadd.f32 %v336_v40, %v310_v41  ;;  %v403_v43 = vpop.f32.mrb[3].mxu0 }
 0x2c5   :  { %315 = vst.msk [vmem:[#allocation7] sm:$0xff] %vm314_vm3, %v311_v42 }
 0x2c6   :  { %496 = shalt.err (!%p493_p6)
}
 0x2c7   :  { %s497_s15 = scalar_lea.hbm %s667_s7, 128 }
 0x2c8   :  { %p498_p7 = scmp.ne.s32.totalorder %s667_s7, %s497_s15  ;;  %p501_p8 = scmp.lt.u32.totalorder %s497_s15, %s667_s7 }
 0x2ca   :  { %p503_p9 = pnand %p501_p8, %p498_p7 }
 0x2cc   :  { %506 = shalt.err (!%p503_p9)
}
 0x2cd   :  { %325 = dma.vmem_to_hbm [thread:$0]  %s323_s13, 128, %s667_s7, [#allocation4]  }
 0x2ce   :  { %511 = dma.done.wait [#allocation4], 128  }
 0x2cf   :  { %512 = vsyncadd [#allocation4], 4294967168 }
 0x2d0   :  { %329 = vsyncpa [#allocation3], 1 }
 0x2d1   :  { %330 = vsyncpa [#allocation6], 1 }
 0x2d2   :  { %331 = vsyncpa [#allocation4], 1 }

</bundles_post_ra>
